<compile_context>
chip_gen: v6e
topology: v6e:2x2x1
jax: 0.10.0
libtpu: 0.0.40
codegen_flags: <defaults>
</compile_context>

<pallas_src>
import functools
import itertools

import jax
import jax.numpy as jnp
import numpy as np
from jax.experimental import pallas as pl
from jax.experimental.pallas import tpu as pltpu


# ----------------------------- Pallas kernel ------------------------------ #
def _cost_kernel(cclass_ref, boxes_ref, tgt_ref, cost_ref,
                 *, bs, K, w_class, w_bbox, w_angle):
    # All transcendental / target-only work was hoisted to the jitted wrapper; the kernel is
    # pure VPU: broadcasts, FMAs, max-reduction over corners, abs, and the weighted sum.
    for b in range(bs):                      # bs is tiny -> unrolled, single invocation
        boxes = boxes_ref[b]                 # [Qp, 2K+2]
        tgt = tgt_ref[b]                     # [16, Tp] packed targets (coordinate-major)

        tcx = tgt[0:1, :]                    # [1, Tp] target center x
        tcy = tgt[1:2, :]                    # [1, Tp] target center y
        ux = [tgt[2 + a:3 + a, :] for a in range(4)]     # unit-vector x components
        uy = [tgt[6 + a:7 + a, :] for a in range(4)]     # unit-vector y components
        mod = [tgt[10 + a:11 + a, :] for a in range(4)]  # corner-vector moduli
        tz = tgt[14:15, :]                   # angle BCE labels

        # Predicted-corner minus target-center differences, hoisted out of the 4x(K-1) loop.
        dxs = [boxes[:, 2 * c:2 * c + 1] - tcx for c in range(K - 1)]       # [Qp, Tp]
        dys = [boxes[:, 2 * c + 1:2 * c + 2] - tcy for c in range(K - 1)]   # [Qp, Tp]

        # ---- cost_bbox: sum_a | max_c  u[t,a].(corner[q,c] - center[t])  -  mod[t,a] | ----
        cost_bbox = None
        for a in range(4):
            pmax = None
            for c in range(K - 1):
                proj = dxs[c] * ux[a] + dys[c] * uy[a]                      # [Qp, Tp]
                pmax = proj if pmax is None else jnp.maximum(pmax, proj)
            term = jnp.abs(pmax - mod[a])
            cost_bbox = term if cost_bbox is None else cost_bbox + term

        # ---- cost_center: L1 distance predicted center <-> target center ----
        ocx = boxes[:, 2 * (K - 1):2 * (K - 1) + 1]                          # [Qp, 1]
        ocy = boxes[:, 2 * K - 1:2 * K]                                      # [Qp, 1]
        cost_center = jnp.abs(ocx - tcx) + jnp.abs(ocy - tcy)                # [Qp, Tp]

        # ---- angle cost: mean_A softplus(x) - mean_A(x) * z  (prefix terms precomputed) ----
        s_indep = boxes[:, 2 * K:2 * K + 1]                                  # [Qp, 1]
        mean_logit = boxes[:, 2 * K + 1:2 * K + 2]                           # [Qp, 1]
        cost_angle = s_indep - mean_logit * tz                               # [Qp, Tp]

        cost_ref[b] = (w_bbox * (cost_bbox + cost_center)
                       + w_class * cclass_ref[b]
                       + w_angle * cost_angle)                 # lane-dense [Qp, Tp] store


# ------------------------------ jitted wrapper ----------------------------- #
@functools.partial(jax.jit, static_argnames=("cost_class", "cost_bbox", "cost_angle"))
def angle_matcher_cost(pred_logits, pred_boxes, pred_angles, tgt_ids, tgt_vecs, tgt_angles,
                       cost_class=1.0, cost_bbox=1.0, cost_angle=1.0):
    bs, Q, n_cls = pred_logits.shape
    K = pred_boxes.shape[2]
    T = tgt_ids.shape[1]
    assert tgt_vecs.shape[2] == 8, "targets must provide 4 corners (8 coords) per box"

    # Lane-dense target axis, sublane-aligned query axis (padding sliced off after the call).
    T_pad = 128 * pl.cdiv(T, 128)
    Q_pad = 8 * pl.cdiv(Q, 8)

    alpha, gamma = 0.25, 2.0

    # ---- focal classification cost on the full [Q, n_cls] logits, then gather at tgt_ids ----
    logits = pred_logits.astype(jnp.float32)
    p = jax.nn.sigmoid(logits)
    neg = (1.0 - alpha) * (p ** gamma) * (-jnp.log(1.0 - p + 1e-8))
    pos = alpha * ((1.0 - p) ** gamma) * (-jnp.log(p + 1e-8))
    cls_full = pos - neg                                                     # [bs, Q, n_cls]
    idx = jnp.broadcast_to(tgt_ids.astype(jnp.int32)[:, None, :], (bs, Q, T))
    cclass = jnp.take_along_axis(cls_full, idx, axis=2)                      # [bs, Q, T]
    cclass = jnp.pad(cclass, ((0, 0), (0, Q_pad - Q), (0, T_pad - T)))       # [bs, Qp, Tp]

    # ---- target-only bbox2vec, packed coordinate-major into one 16-sublane slab ----
    pts = tgt_vecs.astype(jnp.float32).reshape(bs, T, 4, 2)                  # 4 corners
    center = pts.mean(axis=2)                                                # [bs, T, 2]
    v = pts - center[:, :, None, :]                                          # [bs, T, 4, 2]
    # eps clamp so degenerate / padded targets cannot produce NaN/Inf (behavioral difference
    # vs. the reference, which would divide by zero).
    m2 = jnp.maximum(jnp.sum(v * v, axis=-1), 1e-12)                         # [bs, T, 4]
    mod = jnp.sqrt(m2)
    u = v / mod[..., None]                                                   # [bs, T, 4, 2]
    tgt_rows = jnp.concatenate([
        center[:, :, 0][:, None, :],                     # row 0      : tcx
        center[:, :, 1][:, None, :],                     # row 1      : tcy
        jnp.transpose(u[..., 0], (0, 2, 1)),             # rows 2..5  : ux
        jnp.transpose(u[..., 1], (0, 2, 1)),             # rows 6..9  : uy
        jnp.transpose(mod, (0, 2, 1)),                   # rows 10..13: mod
        tgt_angles.astype(jnp.float32)[:, None, :],      # row 14     : angle BCE labels
    ], axis=1)                                                               # [bs, 15, T]
    tgt_packed = jnp.pad(tgt_rows, ((0, 0), (0, 16 - 15), (0, T_pad - T)))   # [bs, 16, Tp]

    # ---- angle prefix terms (depend only on predictions) appended to the box slab ----
    ang = pred_angles.astype(jnp.float32)                                    # [bs, Q, A]
    sp = jnp.maximum(ang, 0.0) + jnp.log1p(jnp.exp(-jnp.abs(ang)))
    s_indep = jnp.mean(sp, axis=2, keepdims=True)                            # [bs, Q, 1]
    mean_logit = jnp.mean(ang, axis=2, keepdims=True)                        # [bs, Q, 1]

    boxes_flat = pred_boxes.reshape(bs, Q, 2 * K).astype(jnp.float32)
    boxes_ext = jnp.concatenate([boxes_flat, s_indep, mean_logit], axis=2)   # [bs, Q, 2K+2]
    boxes_ext = jnp.pad(boxes_ext, ((0, 0), (0, Q_pad - Q), (0, 0)))         # [bs, Qp, 2K+2]

    kernel = functools.partial(_cost_kernel, bs=bs, K=K,
                               w_class=float(cost_class),
                               w_bbox=float(cost_bbox),
                               w_angle=float(cost_angle))

    vmem_spec = pl.BlockSpec(memory_space=pltpu.MemorySpace.VMEM)

    # Single gridless invocation: every operand is tiny and whole-array VMEM-resident.
    # On v7x with larger per-batch work, switch to grid=(bs,) +
    # dimension_semantics=("parallel",) so each TensorCore takes one batch; at DETR scale
    # (Q~900, T_pad>=128, bs 8+) tile over Q with 128-row blocks instead (T_pad stays the
    # lane dim) to stay within v7x's 64 MiB VMEM.
    out = pl.pallas_call(
        kernel,
        out_shape=jax.ShapeDtypeStruct((bs, Q_pad, T_pad), jnp.float32),
        in_specs=[vmem_spec, vmem_spec, vmem_spec],
        out_specs=vmem_spec,
    )(cclass, boxes_ext, tgt_packed)

    return out[:, :Q, :T]


# ----------------------- host-side reference & matching -------------------- #
def _reference_cost(logits, boxes, angles, tgt_ids, tgt_vecs, tgt_angles,
                    w_class=1.0, w_bbox=1.0, w_angle=1.0):
    bs, Q, _ = logits.shape
    K = boxes.shape[2]
    T = tgt_ids.shape[1]
    out = np.zeros((bs, Q, T), np.float64)
    for i in range(bs):
        p = 1.0 / (1.0 + np.exp(-logits[i]))
        out_center = boxes[i, :, K - 1, :]                 # [Q, 2]
        out_bbox = boxes[i, :, :K - 1, :]                  # [Q, K-1, 2]
        bb = tgt_vecs[i]                                   # [T, 8]
        pts = bb.reshape(T, 4, 2)
        center = pts.mean(axis=1)                          # [T, 2]
        v = pts - center[:, None, :]                       # [T, 4, 2]
        mod = np.sqrt((v ** 2).sum(-1))                    # [T, 4]
        u = v / mod[..., None]                             # [T, 4, 2]
        # cost_bbox
        diff = out_bbox[:, None, None, :, :] - center[None, :, None, None, :]  # [Q,T,1,K-1,2]
        proj = (u[None, :, :, None, :] * diff).sum(-1)     # [Q, T, 4(a), K-1(b)]
        proj = proj.max(-1)                                # [Q, T, 4]
        cost_bbox = np.abs(proj - mod[None, :, :]).sum(-1) # [Q, T]
        # cost_center (L1)
        cost_center = np.abs(out_center[:, None, :] - center[None, :, :]).sum(-1)
        # focal class cost
        alpha, gamma = 0.25, 2.0
        neg = (1 - alpha) * p ** gamma * (-np.log(1 - p + 1e-8))
        pos = alpha * (1 - p) ** gamma * (-np.log(p + 1e-8))
        cost_class = (pos - neg)[:, tgt_ids[i]]            # [Q, T]
        # angle cost (BCE-with-logits, mean over angle dim)
        x = angles[i]                                      # [Q, A]
        ca = np.zeros((Q, T))
        for j in range(T):
            z = tgt_angles[i, j]
            bce = np.maximum(x, 0) - x * z + np.log1p(np.exp(-np.abs(x)))
            ca[:, j] = bce.mean(1)
        out[i] = w_bbox * (cost_bbox + cost_center) + w_class * cost_class + w_angle * ca
    return out


def _brute_force_lsa(C):
    # TODO(synk): scipy.optimize.linear_sum_assignment (Hungarian) has no Pallas
    # equivalent; tiny shapes allow exact brute-force enumeration on host.
    Q, T = C.shape
    best, best_rows = None, None
    for rows in itertools.permutations(range(Q), T):
        s = sum(C[r, c] for c, r in enumerate(rows))
        if best is None or s < best:
            best, best_rows = s, rows
    pairs = sorted((r, c) for c, r in enumerate(best_rows))
    return (np.array([r for r, _ in pairs], np.int64),
            np.array([c for _, c in pairs], np.int64))


# ---------------------------------- main ----------------------------------- #
if __name__ == "__main__":
    bs, Q, n_cls, K, A, T = 2, 8, 16, 5, 8, 4
    key = jax.random.PRNGKey(0)
    k1, k2, k3, k4, k5, k6, k7 = jax.random.split(key, 7)

    pred_logits = jax.random.normal(k1, (bs, Q, n_cls), jnp.float32)
    pred_boxes = jax.random.uniform(k2, (bs, Q, K, 2), jnp.float32)
    pred_angles = jax.random.normal(k3, (bs, Q, A), jnp.float32)

    tgt_ids = jax.random.randint(k4, (bs, T), 0, n_cls, jnp.int32)
    tgt_angles = jax.random.uniform(k5, (bs, T), jnp.float32)

    # Build well-formed rotated target boxes (4 corners -> 8 coords) so mods are nonzero.
    ctr = jax.random.uniform(k6, (bs, T, 2), jnp.float32, 0.2, 0.8)
    wh = jax.random.uniform(k7, (bs, T, 2), jnp.float32, 0.05, 0.3)
    theta = jax.random.uniform(jax.random.fold_in(key, 99), (bs, T), jnp.float32, 0.0, 3.14159)
    cs, sn = jnp.cos(theta), jnp.sin(theta)
    signs = jnp.array([[1., 1.], [-1., 1.], [-1., -1.], [1., -1.]], jnp.float32)  # 4 corners
    local = signs[None, None, :, :] * wh[:, :, None, :]                    # [bs,T,4,2]
    rx = local[..., 0] * cs[..., None] - local[..., 1] * sn[..., None]
    ry = local[..., 0] * sn[..., None] + local[..., 1] * cs[..., None]
    corners = jnp.stack([rx, ry], axis=-1) + ctr[:, :, None, :]            # [bs,T,4,2]
    tgt_vecs = corners.reshape(bs, T, 8)

    # --- Pallas cost matrix (jitted wrapper + kernel) ---
    C = angle_matcher_cost(pred_logits, pred_boxes, pred_angles, tgt_ids, tgt_vecs, tgt_angles)
    C = jax.block_until_ready(C)

    # --- verify against a plain-numpy reference of the PyTorch math ---
    C_ref = _reference_cost(np.asarray(pred_logits, np.float64),
                            np.asarray(pred_boxes, np.float64),
                            np.asarray(pred_angles, np.float64),
                            np.asarray(tgt_ids),
                            np.asarray(tgt_vecs, np.float64),
                            np.asarray(tgt_angles, np.float64))
    np.testing.assert_allclose(np.asarray(C), C_ref, rtol=5e-4, atol=5e-4)

    # --- host-side assignment (mirrors linear_sum_assignment output format) ---
    indices = [_brute_force_lsa(np.asarray(C[i])) for i in range(bs)]
    assert all(len(i) == len(j) == min(Q, T) for i, j in indices)

    print("KERNEL_OK")
</pallas_src>

<mosaic_0001>
module attributes {stable_mosaic.version = 11 : i64} {
  func.func @_cost_kernel(%arg0: memref<2x8x128xf32, #tpu.memory_space<vmem>>, %arg1: memref<2x8x12xf32, #tpu.memory_space<vmem>>, %arg2: memref<2x16x128xf32, #tpu.memory_space<vmem>>, %arg3: memref<2x8x128xf32, #tpu.memory_space<vmem>>) attributes {dimension_semantics = [], scalar_prefetch = 0 : i64, scratch_operands = 0 : i64, tpu.core_type = #tpu.core_type<tc>} {
    %c0 = arith.constant 0 : index
    %c0_0 = arith.constant 0 : index
    %c0_1 = arith.constant 0 : index
    %0 = vector.load %arg1[%c0, %c0_0, %c0_1] : memref<2x8x12xf32, #tpu.memory_space<vmem>>, vector<1x8x12xf32>
    %1 = vector.shape_cast %0 : vector<1x8x12xf32> to vector<8x12xf32>
    %c0_2 = arith.constant 0 : index
    %c0_3 = arith.constant 0 : index
    %c0_4 = arith.constant 0 : index
    %2 = vector.load %arg2[%c0_2, %c0_3, %c0_4] : memref<2x16x128xf32, #tpu.memory_space<vmem>>, vector<1x16x128xf32>
    %3 = vector.shape_cast %2 : vector<1x16x128xf32> to vector<16x128xf32>
    %4 = vector.extract_strided_slice %3 {offsets = [0, 0], sizes = [1, 128], strides = [1, 1]} : vector<16x128xf32> to vector<1x128xf32>
    %5 = vector.extract_strided_slice %3 {offsets = [1, 0], sizes = [1, 128], strides = [1, 1]} : vector<16x128xf32> to vector<1x128xf32>
    %6 = vector.extract_strided_slice %3 {offsets = [2, 0], sizes = [1, 128], strides = [1, 1]} : vector<16x128xf32> to vector<1x128xf32>
    %7 = vector.extract_strided_slice %3 {offsets = [3, 0], sizes = [1, 128], strides = [1, 1]} : vector<16x128xf32> to vector<1x128xf32>
    %8 = vector.extract_strided_slice %3 {offsets = [4, 0], sizes = [1, 128], strides = [1, 1]} : vector<16x128xf32> to vector<1x128xf32>
    %9 = vector.extract_strided_slice %3 {offsets = [5, 0], sizes = [1, 128], strides = [1, 1]} : vector<16x128xf32> to vector<1x128xf32>
    %10 = vector.extract_strided_slice %3 {offsets = [6, 0], sizes = [1, 128], strides = [1, 1]} : vector<16x128xf32> to vector<1x128xf32>
    %11 = vector.extract_strided_slice %3 {offsets = [7, 0], sizes = [1, 128], strides = [1, 1]} : vector<16x128xf32> to vector<1x128xf32>
    %12 = vector.extract_strided_slice %3 {offsets = [8, 0], sizes = [1, 128], strides = [1, 1]} : vector<16x128xf32> to vector<1x128xf32>
    %13 = vector.extract_strided_slice %3 {offsets = [9, 0], sizes = [1, 128], strides = [1, 1]} : vector<16x128xf32> to vector<1x128xf32>
    %14 = vector.extract_strided_slice %3 {offsets = [10, 0], sizes = [1, 128], strides = [1, 1]} : vector<16x128xf32> to vector<1x128xf32>
    %15 = vector.extract_strided_slice %3 {offsets = [11, 0], sizes = [1, 128], strides = [1, 1]} : vector<16x128xf32> to vector<1x128xf32>
    %16 = vector.extract_strided_slice %3 {offsets = [12, 0], sizes = [1, 128], strides = [1, 1]} : vector<16x128xf32> to vector<1x128xf32>
    %17 = vector.extract_strided_slice %3 {offsets = [13, 0], sizes = [1, 128], strides = [1, 1]} : vector<16x128xf32> to vector<1x128xf32>
    %18 = vector.extract_strided_slice %3 {offsets = [14, 0], sizes = [1, 128], strides = [1, 1]} : vector<16x128xf32> to vector<1x128xf32>
    %19 = vector.extract_strided_slice %1 {offsets = [0, 0], sizes = [8, 1], strides = [1, 1]} : vector<8x12xf32> to vector<8x1xf32>
    %20 = vector.broadcast %19 : vector<8x1xf32> to vector<8x128xf32>
    %21 = vector.broadcast %4 : vector<1x128xf32> to vector<8x128xf32>
    %22 = arith.subf %20, %21 : vector<8x128xf32>
    %23 = vector.extract_strided_slice %1 {offsets = [0, 2], sizes = [8, 1], strides = [1, 1]} : vector<8x12xf32> to vector<8x1xf32>
    %24 = vector.broadcast %23 : vector<8x1xf32> to vector<8x128xf32>
    %25 = vector.broadcast %4 : vector<1x128xf32> to vector<8x128xf32>
    %26 = arith.subf %24, %25 : vector<8x128xf32>
    %27 = vector.extract_strided_slice %1 {offsets = [0, 4], sizes = [8, 1], strides = [1, 1]} : vector<8x12xf32> to vector<8x1xf32>
    %28 = vector.broadcast %27 : vector<8x1xf32> to vector<8x128xf32>
    %29 = vector.broadcast %4 : vector<1x128xf32> to vector<8x128xf32>
    %30 = arith.subf %28, %29 : vector<8x128xf32>
    %31 = vector.extract_strided_slice %1 {offsets = [0, 6], sizes = [8, 1], strides = [1, 1]} : vector<8x12xf32> to vector<8x1xf32>
    %32 = vector.broadcast %31 : vector<8x1xf32> to vector<8x128xf32>
    %33 = vector.broadcast %4 : vector<1x128xf32> to vector<8x128xf32>
    %34 = arith.subf %32, %33 : vector<8x128xf32>
    %35 = vector.extract_strided_slice %1 {offsets = [0, 1], sizes = [8, 1], strides = [1, 1]} : vector<8x12xf32> to vector<8x1xf32>
    %36 = vector.broadcast %35 : vector<8x1xf32> to vector<8x128xf32>
    %37 = vector.broadcast %5 : vector<1x128xf32> to vector<8x128xf32>
    %38 = arith.subf %36, %37 : vector<8x128xf32>
    %39 = vector.extract_strided_slice %1 {offsets = [0, 3], sizes = [8, 1], strides = [1, 1]} : vector<8x12xf32> to vector<8x1xf32>
    %40 = vector.broadcast %39 : vector<8x1xf32> to vector<8x128xf32>
    %41 = vector.broadcast %5 : vector<1x128xf32> to vector<8x128xf32>
    %42 = arith.subf %40, %41 : vector<8x128xf32>
    %43 = vector.extract_strided_slice %1 {offsets = [0, 5], sizes = [8, 1], strides = [1, 1]} : vector<8x12xf32> to vector<8x1xf32>
    %44 = vector.broadcast %43 : vector<8x1xf32> to vector<8x128xf32>
    %45 = vector.broadcast %5 : vector<1x128xf32> to vector<8x128xf32>
    %46 = arith.subf %44, %45 : vector<8x128xf32>
    %47 = vector.extract_strided_slice %1 {offsets = [0, 7], sizes = [8, 1], strides = [1, 1]} : vector<8x12xf32> to vector<8x1xf32>
    %48 = vector.broadcast %47 : vector<8x1xf32> to vector<8x128xf32>
    %49 = vector.broadcast %5 : vector<1x128xf32> to vector<8x128xf32>
    %50 = arith.subf %48, %49 : vector<8x128xf32>
    %51 = vector.broadcast %6 : vector<1x128xf32> to vector<8x128xf32>
    %52 = arith.mulf %22, %51 : vector<8x128xf32>
    %53 = vector.broadcast %10 : vector<1x128xf32> to vector<8x128xf32>
    %54 = arith.mulf %38, %53 : vector<8x128xf32>
    %55 = arith.addf %52, %54 : vector<8x128xf32>
    %56 = vector.broadcast %6 : vector<1x128xf32> to vector<8x128xf32>
    %57 = arith.mulf %26, %56 : vector<8x128xf32>
    %58 = vector.broadcast %10 : vector<1x128xf32> to vector<8x128xf32>
    %59 = arith.mulf %42, %58 : vector<8x128xf32>
    %60 = arith.addf %57, %59 : vector<8x128xf32>
    %61 = arith.maximumf %55, %60 : vector<8x128xf32>
    %62 = vector.broadcast %6 : vector<1x128xf32> to vector<8x128xf32>
    %63 = arith.mulf %30, %62 : vector<8x128xf32>
    %64 = vector.broadcast %10 : vector<1x128xf32> to vector<8x128xf32>
    %65 = arith.mulf %46, %64 : vector<8x128xf32>
    %66 = arith.addf %63, %65 : vector<8x128xf32>
    %67 = arith.maximumf %61, %66 : vector<8x128xf32>
    %68 = vector.broadcast %6 : vector<1x128xf32> to vector<8x128xf32>
    %69 = arith.mulf %34, %68 : vector<8x128xf32>
    %70 = vector.broadcast %10 : vector<1x128xf32> to vector<8x128xf32>
    %71 = arith.mulf %50, %70 : vector<8x128xf32>
    %72 = arith.addf %69, %71 : vector<8x128xf32>
    %73 = arith.maximumf %67, %72 : vector<8x128xf32>
    %74 = vector.broadcast %14 : vector<1x128xf32> to vector<8x128xf32>
    %75 = arith.subf %73, %74 : vector<8x128xf32>
    %76 = math.absf %75 : vector<8x128xf32>
    %77 = vector.broadcast %7 : vector<1x128xf32> to vector<8x128xf32>
    %78 = arith.mulf %22, %77 : vector<8x128xf32>
    %79 = vector.broadcast %11 : vector<1x128xf32> to vector<8x128xf32>
    %80 = arith.mulf %38, %79 : vector<8x128xf32>
    %81 = arith.addf %78, %80 : vector<8x128xf32>
    %82 = vector.broadcast %7 : vector<1x128xf32> to vector<8x128xf32>
    %83 = arith.mulf %26, %82 : vector<8x128xf32>
    %84 = vector.broadcast %11 : vector<1x128xf32> to vector<8x128xf32>
    %85 = arith.mulf %42, %84 : vector<8x128xf32>
    %86 = arith.addf %83, %85 : vector<8x128xf32>
    %87 = arith.maximumf %81, %86 : vector<8x128xf32>
    %88 = vector.broadcast %7 : vector<1x128xf32> to vector<8x128xf32>
    %89 = arith.mulf %30, %88 : vector<8x128xf32>
    %90 = vector.broadcast %11 : vector<1x128xf32> to vector<8x128xf32>
    %91 = arith.mulf %46, %90 : vector<8x128xf32>
    %92 = arith.addf %89, %91 : vector<8x128xf32>
    %93 = arith.maximumf %87, %92 : vector<8x128xf32>
    %94 = vector.broadcast %7 : vector<1x128xf32> to vector<8x128xf32>
    %95 = arith.mulf %34, %94 : vector<8x128xf32>
    %96 = vector.broadcast %11 : vector<1x128xf32> to vector<8x128xf32>
    %97 = arith.mulf %50, %96 : vector<8x128xf32>
    %98 = arith.addf %95, %97 : vector<8x128xf32>
    %99 = arith.maximumf %93, %98 : vector<8x128xf32>
    %100 = vector.broadcast %15 : vector<1x128xf32> to vector<8x128xf32>
    %101 = arith.subf %99, %100 : vector<8x128xf32>
    %102 = math.absf %101 : vector<8x128xf32>
    %103 = arith.addf %76, %102 : vector<8x128xf32>
    %104 = vector.broadcast %8 : vector<1x128xf32> to vector<8x128xf32>
    %105 = arith.mulf %22, %104 : vector<8x128xf32>
    %106 = vector.broadcast %12 : vector<1x128xf32> to vector<8x128xf32>
    %107 = arith.mulf %38, %106 : vector<8x128xf32>
    %108 = arith.addf %105, %107 : vector<8x128xf32>
    %109 = vector.broadcast %8 : vector<1x128xf32> to vector<8x128xf32>
    %110 = arith.mulf %26, %109 : vector<8x128xf32>
    %111 = vector.broadcast %12 : vector<1x128xf32> to vector<8x128xf32>
    %112 = arith.mulf %42, %111 : vector<8x128xf32>
    %113 = arith.addf %110, %112 : vector<8x128xf32>
    %114 = arith.maximumf %108, %113 : vector<8x128xf32>
    %115 = vector.broadcast %8 : vector<1x128xf32> to vector<8x128xf32>
    %116 = arith.mulf %30, %115 : vector<8x128xf32>
    %117 = vector.broadcast %12 : vector<1x128xf32> to vector<8x128xf32>
    %118 = arith.mulf %46, %117 : vector<8x128xf32>
    %119 = arith.addf %116, %118 : vector<8x128xf32>
    %120 = arith.maximumf %114, %119 : vector<8x128xf32>
    %121 = vector.broadcast %8 : vector<1x128xf32> to vector<8x128xf32>
    %122 = arith.mulf %34, %121 : vector<8x128xf32>
    %123 = vector.broadcast %12 : vector<1x128xf32> to vector<8x128xf32>
    %124 = arith.mulf %50, %123 : vector<8x128xf32>
    %125 = arith.addf %122, %124 : vector<8x128xf32>
    %126 = arith.maximumf %120, %125 : vector<8x128xf32>
    %127 = vector.broadcast %16 : vector<1x128xf32> to vector<8x128xf32>
    %128 = arith.subf %126, %127 : vector<8x128xf32>
    %129 = math.absf %128 : vector<8x128xf32>
    %130 = arith.addf %103, %129 : vector<8x128xf32>
    %131 = vector.broadcast %9 : vector<1x128xf32> to vector<8x128xf32>
    %132 = arith.mulf %22, %131 : vector<8x128xf32>
    %133 = vector.broadcast %13 : vector<1x128xf32> to vector<8x128xf32>
    %134 = arith.mulf %38, %133 : vector<8x128xf32>
    %135 = arith.addf %132, %134 : vector<8x128xf32>
    %136 = vector.broadcast %9 : vector<1x128xf32> to vector<8x128xf32>
    %137 = arith.mulf %26, %136 : vector<8x128xf32>
    %138 = vector.broadcast %13 : vector<1x128xf32> to vector<8x128xf32>
    %139 = arith.mulf %42, %138 : vector<8x128xf32>
    %140 = arith.addf %137, %139 : vector<8x128xf32>
    %141 = arith.maximumf %135, %140 : vector<8x128xf32>
    %142 = vector.broadcast %9 : vector<1x128xf32> to vector<8x128xf32>
    %143 = arith.mulf %30, %142 : vector<8x128xf32>
    %144 = vector.broadcast %13 : vector<1x128xf32> to vector<8x128xf32>
    %145 = arith.mulf %46, %144 : vector<8x128xf32>
    %146 = arith.addf %143, %145 : vector<8x128xf32>
    %147 = arith.maximumf %141, %146 : vector<8x128xf32>
    %148 = vector.broadcast %9 : vector<1x128xf32> to vector<8x128xf32>
    %149 = arith.mulf %34, %148 : vector<8x128xf32>
    %150 = vector.broadcast %13 : vector<1x128xf32> to vector<8x128xf32>
    %151 = arith.mulf %50, %150 : vector<8x128xf32>
    %152 = arith.addf %149, %151 : vector<8x128xf32>
    %153 = arith.maximumf %147, %152 : vector<8x128xf32>
    %154 = vector.broadcast %17 : vector<1x128xf32> to vector<8x128xf32>
    %155 = arith.subf %153, %154 : vector<8x128xf32>
    %156 = math.absf %155 : vector<8x128xf32>
    %157 = arith.addf %130, %156 : vector<8x128xf32>
    %158 = vector.extract_strided_slice %1 {offsets = [0, 8], sizes = [8, 1], strides = [1, 1]} : vector<8x12xf32> to vector<8x1xf32>
    %159 = vector.extract_strided_slice %1 {offsets = [0, 9], sizes = [8, 1], strides = [1, 1]} : vector<8x12xf32> to vector<8x1xf32>
    %160 = vector.broadcast %158 : vector<8x1xf32> to vector<8x128xf32>
    %161 = vector.broadcast %4 : vector<1x128xf32> to vector<8x128xf32>
    %162 = arith.subf %160, %161 : vector<8x128xf32>
    %163 = math.absf %162 : vector<8x128xf32>
    %164 = vector.broadcast %159 : vector<8x1xf32> to vector<8x128xf32>
    %165 = vector.broadcast %5 : vector<1x128xf32> to vector<8x128xf32>
    %166 = arith.subf %164, %165 : vector<8x128xf32>
    %167 = math.absf %166 : vector<8x128xf32>
    %168 = arith.addf %163, %167 : vector<8x128xf32>
    %169 = vector.extract_strided_slice %1 {offsets = [0, 10], sizes = [8, 1], strides = [1, 1]} : vector<8x12xf32> to vector<8x1xf32>
    %170 = vector.extract_strided_slice %1 {offsets = [0, 11], sizes = [8, 1], strides = [1, 1]} : vector<8x12xf32> to vector<8x1xf32>
    %171 = vector.broadcast %170 : vector<8x1xf32> to vector<8x128xf32>
    %172 = vector.broadcast %18 : vector<1x128xf32> to vector<8x128xf32>
    %173 = arith.mulf %171, %172 : vector<8x128xf32>
    %174 = vector.broadcast %169 : vector<8x1xf32> to vector<8x128xf32>
    %175 = arith.subf %174, %173 : vector<8x128xf32>
    %176 = arith.addf %157, %168 : vector<8x128xf32>
    %cst = arith.constant 1.000000e+00 : f32
    %177 = vector.broadcast %cst : f32 to vector<8x128xf32>
    %178 = arith.mulf %177, %176 : vector<8x128xf32>
    %c0_5 = arith.constant 0 : index
    %c0_6 = arith.constant 0 : index
    %c0_7 = arith.constant 0 : index
    %179 = vector.load %arg0[%c0_5, %c0_6, %c0_7] : memref<2x8x128xf32, #tpu.memory_space<vmem>>, vector<1x8x128xf32>
    %180 = vector.shape_cast %179 : vector<1x8x128xf32> to vector<8x128xf32>
    %cst_8 = arith.constant 1.000000e+00 : f32
    %181 = vector.broadcast %cst_8 : f32 to vector<8x128xf32>
    %182 = arith.mulf %181, %180 : vector<8x128xf32>
    %183 = arith.addf %178, %182 : vector<8x128xf32>
    %cst_9 = arith.constant 1.000000e+00 : f32
    %184 = vector.broadcast %cst_9 : f32 to vector<8x128xf32>
    %185 = arith.mulf %184, %175 : vector<8x128xf32>
    %186 = arith.addf %183, %185 : vector<8x128xf32>
    %c0_10 = arith.constant 0 : index
    %c0_11 = arith.constant 0 : index
    %c0_12 = arith.constant 0 : index
    %187 = vector.load %arg3[%c0_10, %c0_11, %c0_12] : memref<2x8x128xf32, #tpu.memory_space<vmem>>, vector<1x8x128xf32>
    %188 = vector.shape_cast %187 : vector<1x8x128xf32> to vector<8x128xf32>
    %189 = vector.shape_cast %186 : vector<8x128xf32> to vector<1x8x128xf32>
    tpu.vector_store %arg3[%c0_10, %c0_11, %c0_12], %189 {strides = array<i32>} : memref<2x8x128xf32, #tpu.memory_space<vmem>>, vector<1x8x128xf32>,
    %c1 = arith.constant 1 : index
    %c0_13 = arith.constant 0 : index
    %c0_14 = arith.constant 0 : index
    %190 = vector.load %arg1[%c1, %c0_13, %c0_14] : memref<2x8x12xf32, #tpu.memory_space<vmem>>, vector<1x8x12xf32>
    %191 = vector.shape_cast %190 : vector<1x8x12xf32> to vector<8x12xf32>
    %c1_15 = arith.constant 1 : index
    %c0_16 = arith.constant 0 : index
    %c0_17 = arith.constant 0 : index
    %192 = vector.load %arg2[%c1_15, %c0_16, %c0_17] : memref<2x16x128xf32, #tpu.memory_space<vmem>>, vector<1x16x128xf32>
    %193 = vector.shape_cast %192 : vector<1x16x128xf32> to vector<16x128xf32>
    %194 = vector.extract_strided_slice %193 {offsets = [0, 0], sizes = [1, 128], strides = [1, 1]} : vector<16x128xf32> to vector<1x128xf32>
    %195 = vector.extract_strided_slice %193 {offsets = [1, 0], sizes = [1, 128], strides = [1, 1]} : vector<16x128xf32> to vector<1x128xf32>
    %196 = vector.extract_strided_slice %193 {offsets = [2, 0], sizes = [1, 128], strides = [1, 1]} : vector<16x128xf32> to vector<1x128xf32>
    %197 = vector.extract_strided_slice %193 {offsets = [3, 0], sizes = [1, 128], strides = [1, 1]} : vector<16x128xf32> to vector<1x128xf32>
    %198 = vector.extract_strided_slice %193 {offsets = [4, 0], sizes = [1, 128], strides = [1, 1]} : vector<16x128xf32> to vector<1x128xf32>
    %199 = vector.extract_strided_slice %193 {offsets = [5, 0], sizes = [1, 128], strides = [1, 1]} : vector<16x128xf32> to vector<1x128xf32>
    %200 = vector.extract_strided_slice %193 {offsets = [6, 0], sizes = [1, 128], strides = [1, 1]} : vector<16x128xf32> to vector<1x128xf32>
    %201 = vector.extract_strided_slice %193 {offsets = [7, 0], sizes = [1, 128], strides = [1, 1]} : vector<16x128xf32> to vector<1x128xf32>
    %202 = vector.extract_strided_slice %193 {offsets = [8, 0], sizes = [1, 128], strides = [1, 1]} : vector<16x128xf32> to vector<1x128xf32>
    %203 = vector.extract_strided_slice %193 {offsets = [9, 0], sizes = [1, 128], strides = [1, 1]} : vector<16x128xf32> to vector<1x128xf32>
    %204 = vector.extract_strided_slice %193 {offsets = [10, 0], sizes = [1, 128], strides = [1, 1]} : vector<16x128xf32> to vector<1x128xf32>
    %205 = vector.extract_strided_slice %193 {offsets = [11, 0], sizes = [1, 128], strides = [1, 1]} : vector<16x128xf32> to vector<1x128xf32>
    %206 = vector.extract_strided_slice %193 {offsets = [12, 0], sizes = [1, 128], strides = [1, 1]} : vector<16x128xf32> to vector<1x128xf32>
    %207 = vector.extract_strided_slice %193 {offsets = [13, 0], sizes = [1, 128], strides = [1, 1]} : vector<16x128xf32> to vector<1x128xf32>
    %208 = vector.extract_strided_slice %193 {offsets = [14, 0], sizes = [1, 128], strides = [1, 1]} : vector<16x128xf32> to vector<1x128xf32>
    %209 = vector.extract_strided_slice %191 {offsets = [0, 0], sizes = [8, 1], strides = [1, 1]} : vector<8x12xf32> to vector<8x1xf32>
    %210 = vector.broadcast %209 : vector<8x1xf32> to vector<8x128xf32>
    %211 = vector.broadcast %194 : vector<1x128xf32> to vector<8x128xf32>
    %212 = arith.subf %210, %211 : vector<8x128xf32>
    %213 = vector.extract_strided_slice %191 {offsets = [0, 2], sizes = [8, 1], strides = [1, 1]} : vector<8x12xf32> to vector<8x1xf32>
    %214 = vector.broadcast %213 : vector<8x1xf32> to vector<8x128xf32>
    %215 = vector.broadcast %194 : vector<1x128xf32> to vector<8x128xf32>
    %216 = arith.subf %214, %215 : vector<8x128xf32>
    %217 = vector.extract_strided_slice %191 {offsets = [0, 4], sizes = [8, 1], strides = [1, 1]} : vector<8x12xf32> to vector<8x1xf32>
    %218 = vector.broadcast %217 : vector<8x1xf32> to vector<8x128xf32>
    %219 = vector.broadcast %194 : vector<1x128xf32> to vector<8x128xf32>
    %220 = arith.subf %218, %219 : vector<8x128xf32>
    %221 = vector.extract_strided_slice %191 {offsets = [0, 6], sizes = [8, 1], strides = [1, 1]} : vector<8x12xf32> to vector<8x1xf32>
    %222 = vector.broadcast %221 : vector<8x1xf32> to vector<8x128xf32>
    %223 = vector.broadcast %194 : vector<1x128xf32> to vector<8x128xf32>
    %224 = arith.subf %222, %223 : vector<8x128xf32>
    %225 = vector.extract_strided_slice %191 {offsets = [0, 1], sizes = [8, 1], strides = [1, 1]} : vector<8x12xf32> to vector<8x1xf32>
    %226 = vector.broadcast %225 : vector<8x1xf32> to vector<8x128xf32>
    %227 = vector.broadcast %195 : vector<1x128xf32> to vector<8x128xf32>
    %228 = arith.subf %226, %227 : vector<8x128xf32>
    %229 = vector.extract_strided_slice %191 {offsets = [0, 3], sizes = [8, 1], strides = [1, 1]} : vector<8x12xf32> to vector<8x1xf32>
    %230 = vector.broadcast %229 : vector<8x1xf32> to vector<8x128xf32>
    %231 = vector.broadcast %195 : vector<1x128xf32> to vector<8x128xf32>
    %232 = arith.subf %230, %231 : vector<8x128xf32>
    %233 = vector.extract_strided_slice %191 {offsets = [0, 5], sizes = [8, 1], strides = [1, 1]} : vector<8x12xf32> to vector<8x1xf32>
    %234 = vector.broadcast %233 : vector<8x1xf32> to vector<8x128xf32>
    %235 = vector.broadcast %195 : vector<1x128xf32> to vector<8x128xf32>
    %236 = arith.subf %234, %235 : vector<8x128xf32>
    %237 = vector.extract_strided_slice %191 {offsets = [0, 7], sizes = [8, 1], strides = [1, 1]} : vector<8x12xf32> to vector<8x1xf32>
    %238 = vector.broadcast %237 : vector<8x1xf32> to vector<8x128xf32>
    %239 = vector.broadcast %195 : vector<1x128xf32> to vector<8x128xf32>
    %240 = arith.subf %238, %239 : vector<8x128xf32>
    %241 = vector.broadcast %196 : vector<1x128xf32> to vector<8x128xf32>
    %242 = arith.mulf %212, %241 : vector<8x128xf32>
    %243 = vector.broadcast %200 : vector<1x128xf32> to vector<8x128xf32>
    %244 = arith.mulf %228, %243 : vector<8x128xf32>
    %245 = arith.addf %242, %244 : vector<8x128xf32>
    %246 = vector.broadcast %196 : vector<1x128xf32> to vector<8x128xf32>
    %247 = arith.mulf %216, %246 : vector<8x128xf32>
    %248 = vector.broadcast %200 : vector<1x128xf32> to vector<8x128xf32>
    %249 = arith.mulf %232, %248 : vector<8x128xf32>
    %250 = arith.addf %247, %249 : vector<8x128xf32>
    %251 = arith.maximumf %245, %250 : vector<8x128xf32>
    %252 = vector.broadcast %196 : vector<1x128xf32> to vector<8x128xf32>
    %253 = arith.mulf %220, %252 : vector<8x128xf32>
    %254 = vector.broadcast %200 : vector<1x128xf32> to vector<8x128xf32>
    %255 = arith.mulf %236, %254 : vector<8x128xf32>
    %256 = arith.addf %253, %255 : vector<8x128xf32>
    %257 = arith.maximumf %251, %256 : vector<8x128xf32>
    %258 = vector.broadcast %196 : vector<1x128xf32> to vector<8x128xf32>
    %259 = arith.mulf %224, %258 : vector<8x128xf32>
    %260 = vector.broadcast %200 : vector<1x128xf32> to vector<8x128xf32>
    %261 = arith.mulf %240, %260 : vector<8x128xf32>
    %262 = arith.addf %259, %261 : vector<8x128xf32>
    %263 = arith.maximumf %257, %262 : vector<8x128xf32>
    %264 = vector.broadcast %204 : vector<1x128xf32> to vector<8x128xf32>
    %265 = arith.subf %263, %264 : vector<8x128xf32>
    %266 = math.absf %265 : vector<8x128xf32>
    %267 = vector.broadcast %197 : vector<1x128xf32> to vector<8x128xf32>
    %268 = arith.mulf %212, %267 : vector<8x128xf32>
    %269 = vector.broadcast %201 : vector<1x128xf32> to vector<8x128xf32>
    %270 = arith.mulf %228, %269 : vector<8x128xf32>
    %271 = arith.addf %268, %270 : vector<8x128xf32>
    %272 = vector.broadcast %197 : vector<1x128xf32> to vector<8x128xf32>
    %273 = arith.mulf %216, %272 : vector<8x128xf32>
    %274 = vector.broadcast %201 : vector<1x128xf32> to vector<8x128xf32>
    %275 = arith.mulf %232, %274 : vector<8x128xf32>
    %276 = arith.addf %273, %275 : vector<8x128xf32>
    %277 = arith.maximumf %271, %276 : vector<8x128xf32>
    %278 = vector.broadcast %197 : vector<1x128xf32> to vector<8x128xf32>
    %279 = arith.mulf %220, %278 : vector<8x128xf32>
    %280 = vector.broadcast %201 : vector<1x128xf32> to vector<8x128xf32>
    %281 = arith.mulf %236, %280 : vector<8x128xf32>
    %282 = arith.addf %279, %281 : vector<8x128xf32>
    %283 = arith.maximumf %277, %282 : vector<8x128xf32>
    %284 = vector.broadcast %197 : vector<1x128xf32> to vector<8x128xf32>
    %285 = arith.mulf %224, %284 : vector<8x128xf32>
    %286 = vector.broadcast %201 : vector<1x128xf32> to vector<8x128xf32>
    %287 = arith.mulf %240, %286 : vector<8x128xf32>
    %288 = arith.addf %285, %287 : vector<8x128xf32>
    %289 = arith.maximumf %283, %288 : vector<8x128xf32>
    %290 = vector.broadcast %205 : vector<1x128xf32> to vector<8x128xf32>
    %291 = arith.subf %289, %290 : vector<8x128xf32>
    %292 = math.absf %291 : vector<8x128xf32>
    %293 = arith.addf %266, %292 : vector<8x128xf32>
    %294 = vector.broadcast %198 : vector<1x128xf32> to vector<8x128xf32>
    %295 = arith.mulf %212, %294 : vector<8x128xf32>
    %296 = vector.broadcast %202 : vector<1x128xf32> to vector<8x128xf32>
    %297 = arith.mulf %228, %296 : vector<8x128xf32>
    %298 = arith.addf %295, %297 : vector<8x128xf32>
    %299 = vector.broadcast %198 : vector<1x128xf32> to vector<8x128xf32>
    %300 = arith.mulf %216, %299 : vector<8x128xf32>
    %301 = vector.broadcast %202 : vector<1x128xf32> to vector<8x128xf32>
    %302 = arith.mulf %232, %301 : vector<8x128xf32>
    %303 = arith.addf %300, %302 : vector<8x128xf32>
    %304 = arith.maximumf %298, %303 : vector<8x128xf32>
    %305 = vector.broadcast %198 : vector<1x128xf32> to vector<8x128xf32>
    %306 = arith.mulf %220, %305 : vector<8x128xf32>
    %307 = vector.broadcast %202 : vector<1x128xf32> to vector<8x128xf32>
    %308 = arith.mulf %236, %307 : vector<8x128xf32>
    %309 = arith.addf %306, %308 : vector<8x128xf32>
    %310 = arith.maximumf %304, %309 : vector<8x128xf32>
    %311 = vector.broadcast %198 : vector<1x128xf32> to vector<8x128xf32>
    %312 = arith.mulf %224, %311 : vector<8x128xf32>
    %313 = vector.broadcast %202 : vector<1x128xf32> to vector<8x128xf32>
    %314 = arith.mulf %240, %313 : vector<8x128xf32>
    %315 = arith.addf %312, %314 : vector<8x128xf32>
    %316 = arith.maximumf %310, %315 : vector<8x128xf32>
    %317 = vector.broadcast %206 : vector<1x128xf32> to vector<8x128xf32>
    %318 = arith.subf %316, %317 : vector<8x128xf32>
    %319 = math.absf %318 : vector<8x128xf32>
    %320 = arith.addf %293, %319 : vector<8x128xf32>
    %321 = vector.broadcast %199 : vector<1x128xf32> to vector<8x128xf32>
    %322 = arith.mulf %212, %321 : vector<8x128xf32>
    %323 = vector.broadcast %203 : vector<1x128xf32> to vector<8x128xf32>
    %324 = arith.mulf %228, %323 : vector<8x128xf32>
    %325 = arith.addf %322, %324 : vector<8x128xf32>
    %326 = vector.broadcast %199 : vector<1x128xf32> to vector<8x128xf32>
    %327 = arith.mulf %216, %326 : vector<8x128xf32>
    %328 = vector.broadcast %203 : vector<1x128xf32> to vector<8x128xf32>
    %329 = arith.mulf %232, %328 : vector<8x128xf32>
    %330 = arith.addf %327, %329 : vector<8x128xf32>
    %331 = arith.maximumf %325, %330 : vector<8x128xf32>
    %332 = vector.broadcast %199 : vector<1x128xf32> to vector<8x128xf32>
    %333 = arith.mulf %220, %332 : vector<8x128xf32>
    %334 = vector.broadcast %203 : vector<1x128xf32> to vector<8x128xf32>
    %335 = arith.mulf %236, %334 : vector<8x128xf32>
    %336 = arith.addf %333, %335 : vector<8x128xf32>
    %337 = arith.maximumf %331, %336 : vector<8x128xf32>
    %338 = vector.broadcast %199 : vector<1x128xf32> to vector<8x128xf32>
    %339 = arith.mulf %224, %338 : vector<8x128xf32>
    %340 = vector.broadcast %203 : vector<1x128xf32> to vector<8x128xf32>
    %341 = arith.mulf %240, %340 : vector<8x128xf32>
    %342 = arith.addf %339, %341 : vector<8x128xf32>
    %343 = arith.maximumf %337, %342 : vector<8x128xf32>
    %344 = vector.broadcast %207 : vector<1x128xf32> to vector<8x128xf32>
    %345 = arith.subf %343, %344 : vector<8x128xf32>
    %346 = math.absf %345 : vector<8x128xf32>
    %347 = arith.addf %320, %346 : vector<8x128xf32>
    %348 = vector.extract_strided_slice %191 {offsets = [0, 8], sizes = [8, 1], strides = [1, 1]} : vector<8x12xf32> to vector<8x1xf32>
    %349 = vector.extract_strided_slice %191 {offsets = [0, 9], sizes = [8, 1], strides = [1, 1]} : vector<8x12xf32> to vector<8x1xf32>
    %350 = vector.broadcast %348 : vector<8x1xf32> to vector<8x128xf32>
    %351 = vector.broadcast %194 : vector<1x128xf32> to vector<8x128xf32>
    %352 = arith.subf %350, %351 : vector<8x128xf32>
    %353 = math.absf %352 : vector<8x128xf32>
    %354 = vector.broadcast %349 : vector<8x1xf32> to vector<8x128xf32>
    %355 = vector.broadcast %195 : vector<1x128xf32> to vector<8x128xf32>
    %356 = arith.subf %354, %355 : vector<8x128xf32>
    %357 = math.absf %356 : vector<8x128xf32>
    %358 = arith.addf %353, %357 : vector<8x128xf32>
    %359 = vector.extract_strided_slice %191 {offsets = [0, 10], sizes = [8, 1], strides = [1, 1]} : vector<8x12xf32> to vector<8x1xf32>
    %360 = vector.extract_strided_slice %191 {offsets = [0, 11], sizes = [8, 1], strides = [1, 1]} : vector<8x12xf32> to vector<8x1xf32>
    %361 = vector.broadcast %360 : vector<8x1xf32> to vector<8x128xf32>
    %362 = vector.broadcast %208 : vector<1x128xf32> to vector<8x128xf32>
    %363 = arith.mulf %361, %362 : vector<8x128xf32>
    %364 = vector.broadcast %359 : vector<8x1xf32> to vector<8x128xf32>
    %365 = arith.subf %364, %363 : vector<8x128xf32>
    %366 = arith.addf %347, %358 : vector<8x128xf32>
    %cst_18 = arith.constant 1.000000e+00 : f32
    %367 = vector.broadcast %cst_18 : f32 to vector<8x128xf32>
    %368 = arith.mulf %367, %366 : vector<8x128xf32>
    %c1_19 = arith.constant 1 : index
    %c0_20 = arith.constant 0 : index
    %c0_21 = arith.constant 0 : index
    %369 = vector.load %arg0[%c1_19, %c0_20, %c0_21] : memref<2x8x128xf32, #tpu.memory_space<vmem>>, vector<1x8x128xf32>
    %370 = vector.shape_cast %369 : vector<1x8x128xf32> to vector<8x128xf32>
    %cst_22 = arith.constant 1.000000e+00 : f32
    %371 = vector.broadcast %cst_22 : f32 to vector<8x128xf32>
    %372 = arith.mulf %371, %370 : vector<8x128xf32>
    %373 = arith.addf %368, %372 : vector<8x128xf32>
    %cst_23 = arith.constant 1.000000e+00 : f32
    %374 = vector.broadcast %cst_23 : f32 to vector<8x128xf32>
    %375 = arith.mulf %374, %365 : vector<8x128xf32>
    %376 = arith.addf %373, %375 : vector<8x128xf32>
    %c1_24 = arith.constant 1 : index
    %c0_25 = arith.constant 0 : index
    %c0_26 = arith.constant 0 : index
    %377 = vector.load %arg3[%c1_24, %c0_25, %c0_26] : memref<2x8x128xf32, #tpu.memory_space<vmem>>, vector<1x8x128xf32>
    %378 = vector.shape_cast %377 : vector<1x8x128xf32> to vector<8x128xf32>
    %379 = vector.shape_cast %376 : vector<8x128xf32> to vector<1x8x128xf32>
    tpu.vector_store %arg3[%c1_24, %c0_25, %c0_26], %379 {strides = array<i32>} : memref<2x8x128xf32, #tpu.memory_space<vmem>>, vector<1x8x128xf32>,
    return
  }
}

</mosaic_0001>

<bundles_post_ra>
// kernel: angle_matcher_cost.1
= control target key start
LH: loop header
LB: loop body
LE: loop exit
PB: predicated region body
PF: predicated region fallthrough
CT: control target
= control target key end

     0   :  { %v465_v0 = vmov 1   ;;  %v466_v1 = vmov 0   ;;  %v467_v3 = vmov 3   ;;  %v468_v4 = vmov 2   ;;  %s774_s1 = inlined_call_operand.vmem [shape: f32[2,8,12], index: 1, kind: input, shape index: {}]   ;;  %s775_s2 = inlined_call_operand.vmem [shape: f32[2,16,128], index: 2, kind: input, shape index: {}]   ;;  %s776_s0 = inlined_call_operand.vmem [shape: f32[2,8,128], index: 0, kind: input, shape index: {}]   ;;  %s777_s3 = inlined_call_operand.vmem [shape: f32[2,8,128], index: 3, kind: output, shape index: {}]  }
   0x1   :  { %447 = vset.pattern.permute.xlu1 %v465_v0  ;;  %445 = vset.pattern.permute.xlu0 %v466_v1  ;;  %v14_v2 = vld [vmem:[%s774_s1] sm:$0xff]  ;;  %v428_v5 = vld [vmem:[%s774_s1 + $0x8] sm:$0xff]  ;;  %v469_v6 = vmov 4   ;;  %v470_v7 = vmov 7   ;;  %v471_v8 = vmov 5   ;;  %v472_v9 = vmov 8  }
   0x2   :  { %43 = vperm.xlu1 %447, %v14_v2   ;;  %19 = vperm.xlu0 %445, %v14_v2   ;;  %v473_v10 = vmov 6   ;;  %v474_v11 = vmov 9   ;;  %v475_v12 = vmov 10   ;;  %v476_v13 = vmov 11   ;;  %v15_v19 = vld [vmem:[%s775_s2] sm:$0xff]  ;;  %v513_v24 = vld [vmem:[%s775_s2 + $0x8] sm:$0xff] }
   0x3   :  { %v22_v14 = vlaneseq  ;;  %v429_v31 = vld [vmem:[%s775_s2 + $0x10] sm:$0xff]  ;;  %v556_v43 = vld [vmem:[%s775_s2 + $0x18] sm:$0xff] }
   0x5   :  { %v23_v15 = vshrl.u32 %v22_v14, 7 }
   0x6   :  { %448 = vset.pattern.permute.xlu1 %v467_v3  ;;  %446 = vset.pattern.permute.xlu0 %v468_v4 }
   0x7   :  { %52 = vperm.xlu1 %448, %v14_v2   ;;  %28 = vperm.xlu0 %446, %v14_v2   ;;  %v48_v18 = vsub.s32 1, %v23_v15  ;;  %v24_v20 = vsub.s32 0, %v23_v15  ;;  %v506_v21 = vsub.s32 6, %v23_v15  ;;  %v102_v22 = vsub.s32 7, %v23_v15 }
   0x8   :  { %v508_v23 = vsub.s32 2, %v23_v15  ;;  %v515_v25 = vsub.s32 3, %v23_v15  ;;  %v517_v26 = vsub.s32 4, %v23_v15  ;;  %v519_v27 = vsub.s32 5, %v23_v15 }
   0x9   :  { %780 = vst [vmem:[#allocation2_spill] sm:$0xff] %v506_v21  ;;  %v521_v30 = vrot.slane %v15_v19, %v48_v18  ;;  %v527_v32 = vrot.slane %v15_v19, %v506_v21  ;;  %v529_v33 = vrot.slane %v15_v19, %v24_v20  ;;  %v531_v34 = vrot.slane %v15_v19, %v102_v22 }
   0xa   :  { %v534_v35 = vrot.slane %v513_v24, %v24_v20  ;;  %v537_v36 = vrot.slane %v513_v24, %v48_v18  ;;  %v540_v37 = vrot.slane %v15_v19, %v508_v23  ;;  %v543_v38 = vrot.slane %v15_v19, %v515_v25 }
   0xb   :  { %449 = vset.pattern.permute.xlu1 %v466_v1  ;;  %233 = vperm.xlu0 %446, %v428_v5   ;;  %v546_v39 = vrot.slane %v15_v19, %v517_v26  ;;  %v549_v40 = vrot.slane %v15_v19, %v519_v27  ;;  %v551_v41 = vrot.slane %v429_v31, %v24_v20 }
   0xc   :  { %224 = vperm.xlu1 %449, %v428_v5   ;;  %v560_v45 = vrot.slane %v429_v31, %v508_v23  ;;  %v563_v46 = vrot.slane %v429_v31, %v515_v25  ;;  %v566_v47 = vrot.slane %v429_v31, %v517_v26  ;;  %v570_v50 = vrot.slane %v429_v31, %v519_v27 }
   0xd   :  { %v572_v51 = vrot.slane %v429_v31, %v48_v18  ;;  %v575_v52 = vrot.slane %v429_v31, %v506_v21  ;;  %v578_v54 = vrot.slane %v429_v31, %v102_v22  ;;  %v581_v55 = vrot.slane %v556_v43, %v24_v20 }
   0xe   :  { %v584_v56 = vrot.slane %v556_v43, %v48_v18 }
   0xf   :  { %451 = vset.pattern.permute.xlu0 %v467_v3 }
  0x10   :  { %450 = vset.pattern.permute.xlu1 %v465_v0  ;;  %257 = vperm.xlu0 %451, %v428_v5  }
  0x11   :  { %248 = vperm.xlu1 %450, %v428_v5  }
  0x14   :  { %454 = vset.pattern.permute.xlu0 %v469_v6 }
  0x15   :  { %452 = vset.pattern.permute.xlu1 %v469_v6  ;;  %238 = vperm.xlu0 %454, %v428_v5  }
  0x16   :  { %33 = vperm.xlu1 %452, %v14_v2  }
  0x19   :  { %456 = vset.pattern.permute.xlu0 %v470_v7 }
  0x1a   :  { %453 = vset.pattern.permute.xlu1 %v471_v8  ;;  %62 = vperm.xlu0 %456, %v14_v2  }
  0x1b   :  { %57 = vperm.xlu1 %453, %v14_v2  }
  0x1e   :  { %458 = vset.pattern.permute.xlu0 %v472_v9 }
  0x1f   :  { %262 = vperm.xlu1 %453, %v428_v5   ;;  %186 = vperm.xlu0 %458, %v14_v2  }
  0x23   :  { %455 = vset.pattern.permute.xlu1 %v473_v10  ;;  %461 = vset.pattern.permute.xlu0 %v474_v11 }
  0x24   :  { %38 = vperm.xlu1 %455, %v14_v2   ;;  %397 = vperm.xlu0 %461, %v428_v5  }
  0x28   :  { %243 = vperm.xlu1 %455, %v428_v5   ;;  %463 = vset.pattern.permute.xlu0 %v475_v12 }
  0x29   :  { %208 = vperm.xlu0 %463, %v14_v2  }
  0x2c   :  { %457 = vset.pattern.permute.xlu1 %v470_v7 }
  0x2d   :  { %267 = vperm.xlu1 %457, %v428_v5  }
  0x31   :  { %459 = vset.pattern.permute.xlu1 %v474_v11 }
  0x32   :  { %192 = vperm.xlu1 %459, %v14_v2  }
  0x36   :  { %460 = vset.pattern.permute.xlu1 %v472_v9 }
  0x37   :  { %391 = vperm.xlu1 %460, %v428_v5  }
  0x3b   :  { %462 = vset.pattern.permute.xlu1 %v476_v13 }
  0x3c   :  { %199 = vperm.xlu1 %462, %v14_v2  }
  0x40   :  { %404 = vperm.xlu1 %462, %v428_v5  }
  0x44   :  { %464 = vset.pattern.permute.xlu1 %v475_v12 }
  0x45   :  { %413 = vperm.xlu1 %464, %v428_v5  }
  0x7d   :  { %v44_v16 = vpop.permute.xlu1 %43  ;;  %v20_v17 = vpop.permute.xlu0 %19 }
  0x7e   :  { %v50_v44 = vsub.f32 %v44_v16, %v521_v30  ;;  %v26_v49 = vsub.f32 %v20_v17, %v529_v33 }
  0x80   :  { %v75_v61 = vmul.f32 %v527_v32, %v50_v44  ;;  %v104_v62 = vmul.f32 %v531_v34, %v50_v44  ;;  %v134_v63 = vmul.f32 %v534_v35, %v50_v44  ;;  %v164_v1 = vmul.f32 %v537_v36, %v50_v44 }
  0x81   :  { %v70_v2 = vmul.f32 %v540_v37, %v26_v49  ;;  %v99_v3 = vmul.f32 %v543_v38, %v26_v49  ;;  %v129_v4 = vmul.f32 %v546_v39, %v26_v49  ;;  %v159_v7 = vmul.f32 %v549_v40, %v26_v49 }
  0x82   :  { %v53_v28 = vpop.permute.xlu1 %52  ;;  %v29_v29 = vpop.permute.xlu0 %28 }
  0x83   :  { %v55_v53 = vsub.f32 %v53_v28, %v521_v30  ;;  %v31_v57 = vsub.f32 %v29_v29, %v529_v33  ;;  %v621_v29 = vadd.f32 %v75_v61, %v70_v2  ;;  %v623_v31 = vadd.f32 %v104_v62, %v99_v3 }
  0x85   :  { %v78_v8 = vmul.f32 %v527_v32, %v55_v53  ;;  %v107_v9 = vmul.f32 %v531_v34, %v55_v53  ;;  %v137_v10 = vmul.f32 %v534_v35, %v55_v53  ;;  %v167_v11 = vmul.f32 %v537_v36, %v55_v53 }
  0x86   :  { %v234_v42 = vpop.permute.xlu0 %233  ;;  %v77_v12 = vmul.f32 %v540_v37, %v31_v57  ;;  %v106_v13 = vmul.f32 %v543_v38, %v31_v57  ;;  %v136_v14 = vmul.f32 %v546_v39, %v31_v57  ;;  %v166_v15 = vmul.f32 %v549_v40, %v31_v57 }
  0x87   :  { %v225_v48 = vpop.permute.xlu1 %224  ;;  %v236_v16 = vsub.f32 %v234_v42, %v551_v41  ;;  %v625_v42 = vadd.f32 %v134_v63, %v129_v4 }
  0x88   :  { %v231_v19 = vsub.f32 %v225_v48, %v551_v41  ;;  %v629_v48 = vadd.f32 %v164_v1, %v159_v7  ;;  %v631_v53 = vadd.f32 %v78_v8, %v77_v12  ;;  %v633_v57 = vadd.f32 %v107_v9, %v106_v13 }
  0x89   :  { %v637_v28 = vadd.f32 %v167_v11, %v166_v15  ;;  %v282_v61 = vmul.f32 %v560_v45, %v236_v16  ;;  %v311_v1 = vmul.f32 %v563_v46, %v236_v16  ;;  %v341_v8 = vmul.f32 %v566_v47, %v236_v16 }
  0x8a   :  { %v275_v2 = vmul.f32 %v560_v45, %v231_v19  ;;  %v304_v7 = vmul.f32 %v563_v46, %v231_v19  ;;  %v334_v11 = vmul.f32 %v566_v47, %v231_v19  ;;  %v364_v12 = vmul.f32 %v570_v50, %v231_v19 }
  0x8b   :  { %v258_v6 = vpop.permute.xlu0 %257  ;;  %v371_v13 = vmul.f32 %v570_v50, %v236_v16  ;;  %v80_v60 = vmax.f32 %v621_v29, %v631_v53  ;;  %v169_v29 = vmax.f32 %v629_v48, %v637_v28 }
  0x8c   :  { %v249_v5 = vpop.permute.xlu1 %248  ;;  %v260_v18 = vsub.f32 %v258_v6, %v572_v51 }
  0x8d   :  { %v255_v17 = vsub.f32 %v249_v5, %v572_v51  ;;  %v635_v5 = vadd.f32 %v137_v10, %v136_v14 }
  0x8e   :  { %v283_v63 = vmul.f32 %v575_v52, %v260_v18  ;;  %v312_v4 = vmul.f32 %v578_v54, %v260_v18  ;;  %v342_v10 = vmul.f32 %v581_v55, %v260_v18  ;;  %v372_v20 = vmul.f32 %v584_v56, %v260_v18 }
  0x8f   :  { %v280_v62 = vmul.f32 %v575_v52, %v255_v17  ;;  %v309_v3 = vmul.f32 %v578_v54, %v255_v17  ;;  %v339_v9 = vmul.f32 %v581_v55, %v255_v17  ;;  %v369_v14 = vmul.f32 %v584_v56, %v255_v17 }
  0x90   :  { %v239_v6 = vpop.permute.xlu0 %238  ;;  %v656_v22 = vadd.f32 %v283_v63, %v282_v61  ;;  %v664_v58 = vadd.f32 %v312_v4, %v311_v1  ;;  %v109_v17 = vmax.f32 %v623_v31, %v633_v57  ;;  %v139_v61 = vmax.f32 %v625_v42, %v635_v5 }
  0x91   :  { %v34_v44 = vpop.permute.xlu1 %33  ;;  %v654_v49 = vadd.f32 %v280_v62, %v275_v2  ;;  %v662_v59 = vadd.f32 %v309_v3, %v304_v7  ;;  %v671_v62 = vadd.f32 %v339_v9, %v334_v11  ;;  %v673_v18 = vadd.f32 %v342_v10, %v341_v8 }
  0x92   :  { %v36_v16 = vsub.f32 %v34_v44, %v529_v33  ;;  %v241_v44 = vsub.f32 %v239_v6, %v551_v41  ;;  %v680_v1 = vadd.f32 %v369_v14, %v364_v12  ;;  %v684_v42 = vadd.f32 %v372_v20, %v371_v13 }
  0x93   :  { %v285_v31 = vmax.f32 %v654_v49, %v656_v22  ;;  %v314_v5 = vmax.f32 %v662_v59, %v664_v58 }
  0x94   :  { %v81_v28 = vmul.f32 %v540_v37, %v36_v16  ;;  %v110_v48 = vmul.f32 %v543_v38, %v36_v16  ;;  %v140_v4 = vmul.f32 %v546_v39, %v36_v16  ;;  %v170_v49 = vmul.f32 %v549_v40, %v36_v16 }
  0x95   :  { %v63_v19 = vpop.permute.xlu0 %62  ;;  %v286_v58 = vmul.f32 %v560_v45, %v241_v44  ;;  %v315_v59 = vmul.f32 %v563_v46, %v241_v44  ;;  %v345_v9 = vmul.f32 %v566_v47, %v241_v44  ;;  %v375_v10 = vmul.f32 %v570_v50, %v241_v44 }
  0x96   :  { %v58_v15 = vpop.permute.xlu1 %57  ;;  %v65_v57 = vsub.f32 %v63_v19, %v521_v30 }
  0x97   :  { %v60_v0 = vsub.f32 %v58_v15, %v521_v30 }
  0x98   :  { %v86_v12 = vmul.f32 %v527_v32, %v65_v57  ;;  %v115_v15 = vmul.f32 %v531_v34, %v65_v57  ;;  %v145_v16 = vmul.f32 %v534_v35, %v65_v57 }
  0x99   :  { %v82_v53 = vmul.f32 %v527_v32, %v60_v0  ;;  %v111_v63 = vmul.f32 %v531_v34, %v60_v0  ;;  %v141_v22 = vmul.f32 %v534_v35, %v60_v0  ;;  %v171_v20 = vmul.f32 %v537_v36, %v60_v0 }
  0x9a   :  { %v263_v2 = vpop.permute.xlu1 %262  ;;  %v187_v13 = vpop.permute.xlu0 %186 }
  0x9b   :  { %v265_v3 = vsub.f32 %v263_v2, %v572_v51  ;;  %v83_v7 = vadd.f32 %v82_v53, %v81_v28  ;;  %v112_v8 = vadd.f32 %v111_v63, %v110_v48  ;;  %v142_v19 = vadd.f32 %v141_v22, %v140_v4 }
  0x9c   :  { %v172_v53 = vadd.f32 %v171_v20, %v170_v49  ;;  %v175_v2 = vmul.f32 %v537_v36, %v65_v57  ;;  %v189_v32 = vsub.f32 %v187_v13, %v529_v33 }
  0x9d   :  { %v287_v14 = vmul.f32 %v575_v52, %v265_v3  ;;  %v316_v0 = vmul.f32 %v578_v54, %v265_v3  ;;  %v84_v28 = vmax.f32 %v80_v60, %v83_v7  ;;  %v113_v44 = vmax.f32 %v109_v17, %v112_v8 }
  0x9e   :  { %v346_v48 = vmul.f32 %v581_v55, %v265_v3  ;;  %v376_v22 = vmul.f32 %v584_v56, %v265_v3  ;;  %v143_v60 = vmax.f32 %v139_v61, %v142_v19  ;;  %v190_v8 = vand.u32 2147483647, %v189_v32 }
  0x9f   :  { %v39_v11 = vpop.permute.xlu1 %38  ;;  %v288_v20 = vadd.f32 %v287_v14, %v286_v58  ;;  %v317_v49 = vadd.f32 %v316_v0, %v315_v59 }
  0xa0   :  { %v41_v63 = vsub.f32 %v39_v11, %v529_v33  ;;  %v374_v33 = vmax.f32 %v680_v1, %v684_v42  ;;  %v377_v58 = vadd.f32 %v376_v22, %v375_v10  ;;  %v781_v1 = vrot.slane %v513_v24, %v508_v23  ;;  %v398_v22 = vpop.permute.xlu0 %397 }
  0xa1   :  { %v318_v3 = vmax.f32 %v314_v5, %v317_v49  ;;  %v782_v42 = vrot.slane %v513_v24, %v515_v25 }
  0xa2   :  { %v85_v6 = vmul.f32 %v540_v37, %v41_v63  ;;  %v114_v21 = vmul.f32 %v543_v38, %v41_v63  ;;  %v144_v34 = vmul.f32 %v546_v39, %v41_v63  ;;  %v174_v35 = vmul.f32 %v549_v40, %v41_v63 }
  0xa3   :  { %v244_v4 = vpop.permute.xlu1 %243  ;;  %v173_v37 = vmax.f32 %v169_v29, %v172_v53  ;;  %v347_v39 = vadd.f32 %v346_v48, %v345_v9  ;;  %v289_v63 = vmax.f32 %v285_v31, %v288_v20 }
  0xa4   :  { %v246_v36 = vsub.f32 %v244_v4, %v551_v41  ;;  %v87_v17 = vadd.f32 %v86_v12, %v85_v6  ;;  %v116_v57 = vadd.f32 %v115_v15, %v114_v21  ;;  %v146_v7 = vadd.f32 %v145_v16, %v144_v34 }
  0xa5   :  { %v176_v38 = vadd.f32 %v175_v2, %v174_v35  ;;  %v784_v16 = vmax.f32 %v671_v62, %v673_v18 }
  0xa6   :  { %v88_v11 = vmax.f32 %v84_v28, %v87_v17  ;;  %v117_v40 = vmax.f32 %v113_v44, %v116_v57  ;;  %v147_v13 = vmax.f32 %v143_v60, %v146_v7  ;;  %v290_v59 = vmul.f32 %v560_v45, %v246_v36 }
  0xa7   :  { %v319_v61 = vmul.f32 %v563_v46, %v246_v36  ;;  %v349_v9 = vmul.f32 %v566_v47, %v246_v36  ;;  %v379_v31 = vmul.f32 %v570_v50, %v246_v36  ;;  %v783_v45 = vrot.slane %v513_v24, %v517_v26 }
  0xa8   :  { %v268_v14 = vpop.permute.xlu1 %267  ;;  %v93_v29 = vsub.f32 %v88_v11, %v781_v1  ;;  %v122_v6 = vsub.f32 %v117_v40, %v782_v42  ;;  %v177_v10 = vmax.f32 %v173_v37, %v176_v38  ;;  %v348_v19 = vmax.f32 %v784_v16, %v347_v39 }
  0xa9   :  { %v270_v21 = vsub.f32 %v268_v14, %v572_v51  ;;  %v152_v5 = vsub.f32 %v147_v13, %v783_v45  ;;  %v378_v47 = vmax.f32 %v374_v33, %v377_v58  ;;  %v786_v36 = vrot.slane %v556_v43, %v508_v23 }
  0xaa   :  { %v94_v53 = vand.u32 2147483647, %v93_v29  ;;  %v123_v50 = vand.u32 2147483647, %v122_v6  ;;  %v788_v57 = vrot.slane %v556_v43, %v517_v26  ;;  %v400_v39 = vsub.f32 %v398_v22, %v572_v51  ;;  %v209_v29 = vpop.permute.xlu0 %208 }
  0xab   :  { %v291_v46 = vmul.f32 %v575_v52, %v270_v21  ;;  %v320_v12 = vmul.f32 %v578_v54, %v270_v21  ;;  %v350_v0 = vmul.f32 %v581_v55, %v270_v21  ;;  %v380_v15 = vmul.f32 %v584_v56, %v270_v21 }
  0xac   :  { %v124_v34 = vadd.f32 %v123_v50, %v94_v53  ;;  %v153_v54 = vand.u32 2147483647, %v152_v5  ;;  %v785_v55 = vrot.slane %v513_v24, %v519_v27  ;;  %v789_v23 = vrot.slane %v556_v43, %v519_v27 }
  0xad   :  { %v292_v2 = vadd.f32 %v291_v46, %v290_v59  ;;  %v321_v28 = vadd.f32 %v320_v12, %v319_v61  ;;  %v351_v44 = vadd.f32 %v350_v0, %v349_v9  ;;  %v381_v48 = vadd.f32 %v380_v15, %v379_v31  ;;  %v193_v32 = vpop.permute.xlu1 %192  ;;  %v431_v46 = vld [vmem:[%s776_s0 + $0x8] sm:$0xff] }
  0xae   :  { %v195_v52 = vsub.f32 %v193_v32, %v521_v30  ;;  %v182_v56 = vsub.f32 %v177_v10, %v785_v55  ;;  %v154_v49 = vadd.f32 %v153_v54, %v124_v34  ;;  %v787_v30 = vrot.slane %v556_v43, %v515_v25  ;;  %v790_v25 = vld [vmem:[#allocation2_spill] sm:$0xff] }
  0xaf   :  { %v293_v35 = vmax.f32 %v289_v63, %v292_v2  ;;  %v322_v4 = vmax.f32 %v318_v3, %v321_v28  ;;  %v352_v62 = vmax.f32 %v348_v19, %v351_v44  ;;  %v382_v18 = vmax.f32 %v378_v47, %v381_v48 }
  0xb0   :  { %v196_v20 = vand.u32 2147483647, %v195_v52  ;;  %v183_v33 = vand.u32 2147483647, %v182_v56  ;;  %v205_v58 = vrot.slane %v513_v24, %v790_v25  ;;  %v401_v21 = vand.u32 2147483647, %v400_v39 }
  0xb1   :  { %v298_v60 = vsub.f32 %v293_v35, %v786_v36  ;;  %v327_v17 = vsub.f32 %v322_v4, %v787_v30  ;;  %v357_v7 = vsub.f32 %v352_v62, %v788_v57  ;;  %v387_v63 = vsub.f32 %v382_v18, %v789_v23 }
  0xb2   :  { %v197_v37 = vadd.f32 %v196_v20, %v190_v8  ;;  %v392_v38 = vpop.permute.xlu1 %391  ;;  %v184_v3 = vadd.f32 %v183_v33, %v154_v49  ;;  %v213_v8 = vld [vmem:[%s776_s0] sm:$0xff]  ;;  %v410_v24 = vrot.slane %v556_v43, %v790_v25 }
  0xb3   :  { %v394_v11 = vsub.f32 %v392_v38, %v551_v41  ;;  %v299_v40 = vand.u32 2147483647, %v298_v60  ;;  %v328_v13 = vand.u32 2147483647, %v327_v17  ;;  %v358_v26 = vand.u32 2147483647, %v357_v7 }
  0xb4   :  { %v212_v14 = vadd.f32 %v197_v37, %v184_v3  ;;  %v388_v41 = vand.u32 2147483647, %v387_v63 }
  0xb5   :  { %v329_v59 = vadd.f32 %v328_v13, %v299_v40  ;;  %v395_v51 = vand.u32 2147483647, %v394_v11 }
  0xb6   :  { %v214_v9 = vadd.f32 %v213_v8, %v212_v14 }
  0xb7   :  { %v359_v61 = vadd.f32 %v358_v26, %v329_v59  ;;  %v200_v1 = vpop.permute.xlu1 %199  ;;  %v402_v31 = vadd.f32 %v401_v21, %v395_v51 }
  0xb8   :  { %v206_v42 = vmul.f32 %v205_v58, %v200_v1 }
  0xb9   :  { %v389_v27 = vadd.f32 %v388_v41, %v359_v61 }
  0xba   :  { %v211_v6 = vsub.f32 %v209_v29, %v206_v42 }
  0xbb   :  { %v405_v45 = vpop.permute.xlu1 %404  ;;  %v417_v10 = vadd.f32 %v402_v31, %v389_v27 }
  0xbc   :  { %v215_v5 = vadd.f32 %v214_v9, %v211_v6  ;;  %v411_v12 = vmul.f32 %v410_v24, %v405_v45 }
  0xbd   :  { %v420_v16 = vadd.f32 %v431_v46, %v417_v10 }
  0xbe   :  { %216 = vst [vmem:[%s777_s3] sm:$0xff] %v215_v5 }
  0xc0   :  { %v414_v0 = vpop.permute.xlu1 %413 }
  0xc1   :  { %v416_v15 = vsub.f32 %v414_v0, %v411_v12 }
  0xc3   :  { %v421_v19 = vadd.f32 %v420_v16, %v416_v15 }
  0xc5   :  { %432 = vst [vmem:[%s777_s3 + $0x8] sm:$0xff] %v421_v19 }

</bundles_post_ra>
